<compile_context>
chip_gen: v7x
topology: tpu7x:2x2x1
jax: 0.10.0
libtpu: 0.0.40
codegen_flags: <defaults>
</compile_context>

<pallas_src>
import jax
import jax.numpy as jnp
from jax import lax
from jax.experimental import pallas as pl
from jax.experimental.pallas import tpu as pltpu


# ---------------------------------------------------------------------------
# VMEM configuration (generation aware, conservative fallback)
# ---------------------------------------------------------------------------

def _vmem_config():
    """Return (budget_bytes, limit_bytes) for the per-step working set."""
    phys = None
    try:
        info = pltpu.get_tpu_info()
        phys = int(getattr(info, "vmem_capacity_bytes", 0)) or None
    except Exception:
        phys = None
    if phys is None:
        phys = 64 * 1024 * 1024            # assume smallest (v7x) if unknown
    limit = min((phys * 3) // 4, 100 * 1024 * 1024)   # headroom for Mosaic scratch
    budget = int(limit * 0.8)
    return budget, limit


def _round_up(x, m):
    return ((x + m - 1) // m) * m


def _parallel_cap(N, Ho, target_steps=4):
    """Cap tOh so N * (Ho // tOh) >= target_steps (keep both v7x cores busy)."""
    need_bands = max(1, -(-target_steps // N))          # ceil(target / N)
    return max(1, Ho // need_bands)


def _pick_band(Ho, per_row_bytes, fixed_bytes, budget, max_t):
    """Largest divisor of Ho (<= max_t) whose per-step working set fits."""
    best = 1
    hi = max(1, min(Ho, max_t))
    for t in range(1, hi + 1):
        if Ho % t:
            continue
        if fixed_bytes + t * per_row_bytes <= budget:
            best = t
    return best


# ----------------------------- Pallas kernels ------------------------------

def _conv_s2d_kernel(main_ref, halo_ref, w00_ref, w01_ref, w10_ref, w11_ref,
                     b_ref, out_ref):
    """3x3/stride-2 conv on space-to-depth input; one output-row band per step.

    main_ref : (1, tOh, Wp2r, 4C)  s2d cell rows [i*tOh, (i+1)*tOh)
    halo_ref : (1, 1,   Wp2r, 4C)  s2d cell row   (i+1)*tOh
    w00..w11 : (4C | 4C | 2C | C, OCt)  per-quadrant tap matrices (K = 11C)
    b_ref    : (1, OCt)            bias (f32)
    out_ref  : (1, tOh, Wo, OCt)
    """
    tOh = main_ref.shape[1]
    Wo = out_ref.shape[2]
    C = main_ref.shape[3] // 4
    M = tOh * Wo

    top = main_ref[0]                                   # (tOh, Wp2r, 4C)
    halo = halo_ref[0]                                  # (1,   Wp2r, 4C)

    # Quadrant operands.  Only the right-column operands (p01 / p11) need the
    # +1 sublane shift; bottom-row operands only need the di=0 channel half.
    p00 = top[:, 0:Wo, :]                               # kh in {0,1}, kw in {0,1}
    p01 = top[:, 1:Wo + 1, :]                           # kh in {0,1}, kw = 2
    if tOh > 1:
        bot = jnp.concatenate([top[1:, :, :2 * C], halo[:, :, :2 * C]], axis=0)
    else:
        bot = halo[:, :, :2 * C]                        # (tOh, Wp2r, 2C)
    p10 = bot[:, 0:Wo, :]                               # kh = 2, kw in {0,1}
    p11 = bot[:, 1:Wo + 1, :C]                          # kh = 2, kw = 2

    # Four accumulating MXU matmuls with f32 accumulation (total K = 11C).
    acc = jnp.dot(p00.reshape(M, 4 * C), w00_ref[...],
                  preferred_element_type=jnp.float32)
    acc += jnp.dot(p01.reshape(M, 4 * C), w01_ref[...],
                   preferred_element_type=jnp.float32)
    acc += jnp.dot(p10.reshape(M, 2 * C), w10_ref[...],
                   preferred_element_type=jnp.float32)
    acc += jnp.dot(p11.reshape(M, C), w11_ref[...],
                   preferred_element_type=jnp.float32)
    acc += b_ref[...].astype(jnp.float32)

    out_ref[...] = acc.reshape(out_ref.shape).astype(out_ref.dtype)


def _avgpool_s2d_kernel(xs_ref, out_ref):
    """2x2/stride-2 average pool on the packed 4*C layout (input read once)."""
    C = out_ref.shape[3]
    x = xs_ref[...]                                     # (1, tOh, Wo, 4C)
    acc = (x[..., 0 * C:1 * C].astype(jnp.float32)
           + x[..., 1 * C:2 * C].astype(jnp.float32)
           + x[..., 2 * C:3 * C].astype(jnp.float32)
           + x[..., 3 * C:4 * C].astype(jnp.float32))
    out_ref[...] = (acc * 0.25).astype(out_ref.dtype)


# ------------------------------- JAX glue -----------------------------------

def _conv_downsample(x_nchw, weight, bias, compute_dtype=None):
    """3x3 stride-2 conv with PyTorch-style (0,1,0,1) zero padding. NCHW in/out."""
    N, C, H, W = x_nchw.shape
    Ho, Wo = H // 2, W // 2
    Hp2, Wp2 = Ho + 1, Wo + 1

    cdt = jnp.dtype(compute_dtype) if compute_dtype is not None else jnp.dtype(x_nchw.dtype)
    out_dtype = x_nchw.dtype
    in_b = cdt.itemsize
    out_b = jnp.dtype(out_dtype).itemsize

    budget, limit = _vmem_config()

    # ---- input: fused NCHW -> space-to-depth NHWC (one XLA pass) -----------
    # xs[n, i, j, (di*2+dj)*C + c] = x_pad[n, c, 2i+di, 2j+dj]
    # TODO(synk): reading NCHW directly inside the kernel (and writing NCHW
    # directly) would remove this extra HBM round trip plus the output
    # transpose below (~2-3x less HBM traffic); it needs in-kernel
    # lane-strided selection / transposes and is left out for robustness.
    sub = {1: 32, 2: 16, 4: 8}.get(in_b, 8)
    Wp2r = _round_up(Wp2, sub)                 # sublane-aligned band width
    xp = jnp.pad(x_nchw, ((0, 0), (0, 0), (0, 2 * Hp2 - H), (0, 2 * Wp2r - W)))
    xs = xp.reshape(N, C, Hp2, 2, Wp2r, 2)
    xs = jnp.transpose(xs, (0, 2, 4, 3, 5, 1)).reshape(N, Hp2, Wp2r, 4 * C)
    xs = xs.astype(cdt)

    # ---- weights: per-quadrant tap matrices (K = 4C + 4C + 2C + C = 11C) ---
    wt = jnp.transpose(weight, (2, 3, 1, 0))             # (kh, kw, IC, OC)
    w00 = wt[0:2, 0:2].reshape(4 * C, C).astype(cdt)      # kh in {0,1}, kw in {0,1}
    w01 = jnp.stack([wt[0:2, 2], jnp.zeros_like(wt[0:2, 2])],
                    axis=1).reshape(4 * C, C).astype(cdt)  # kh in {0,1}, kw = 2
    w10 = wt[2, 0:2].reshape(2 * C, C).astype(cdt)         # kh = 2, kw in {0,1}
    w11 = wt[2, 2].astype(cdt)                             # kh = 2, kw = 2
    b2 = bias.reshape(1, C).astype(jnp.float32)

    # ---- output-channel tiling (keeps the resident weight small, v7x) ------
    w_total = 11 * C * C * in_b
    oct_ = C
    if w_total > budget // 3:
        target = max(1, (budget // 3) // (2 * 11 * C * in_b))
        cands = [d for d in range(128, C, 128) if C % d == 0]
        if cands:
            fitting = [d for d in cands if d <= target]
            oct_ = max(fitting) if fitting else min(cands)
    n_oct = C // oct_

    # Single-buffer the grid-invariant weight/bias blocks when they are big
    # enough for double-buffering to matter (perf review item 1).
    if n_oct == 1 and w_total > (1 << 20):
        w_mode = pl.Buffered(1)
        w_bufs = 1
    else:
        w_mode = None
        w_bufs = 2

    # ---- band size: biggest fitting the budget, capped for parallelism -----
    per_row = (2 * Wp2r * 4 * C * in_b        # main band (double buffered)
               + Wp2r * 2 * C * in_b          # bottom-row (2C) concat copy
               + Wo * 11 * C * in_b           # materialized quadrant slices
               + 2 * Wo * oct_ * 4            # f32 accumulator (+ temp)
               + 2 * Wo * oct_ * out_b)       # output block (double buffered)
    fixed = (2 * Wp2r * 4 * C * in_b          # halo block (double buffered)
             + w_bufs * 11 * C * oct_ * in_b  # resident weights
             + 2 * 4 * oct_)                  # bias
    tOh = _pick_band(Ho, per_row, fixed, budget, _parallel_cap(N, Ho))

    grid = (N, Ho // tOh, n_oct)

    def band_map(n, i, oc):
        return (n, i, 0, 0)

    def halo_map(n, i, oc, _t=tOh):
        return (n, (i + 1) * _t, 0, 0)

    def w_map(n, i, oc):
        return (0, oc)

    def out_map(n, i, oc):
        return (n, i, 0, oc)

    out = pl.pallas_call(
        _conv_s2d_kernel,
        out_shape=jax.ShapeDtypeStruct((N, Ho, Wo, C), out_dtype),
        grid_spec=pltpu.PrefetchScalarGridSpec(
            num_scalar_prefetch=0,
            grid=grid,
            in_specs=[
                pl.BlockSpec((1, tOh, Wp2r, 4 * C), band_map),
                pl.BlockSpec((1, 1, Wp2r, 4 * C), halo_map),
                pl.BlockSpec((4 * C, oct_), w_map, pipeline_mode=w_mode),
                pl.BlockSpec((4 * C, oct_), w_map, pipeline_mode=w_mode),
                pl.BlockSpec((2 * C, oct_), w_map, pipeline_mode=w_mode),
                pl.BlockSpec((C, oct_), w_map, pipeline_mode=w_mode),
                pl.BlockSpec((1, oct_), w_map, pipeline_mode=w_mode),
            ],
            out_specs=pl.BlockSpec((1, tOh, Wo, oct_), out_map),
        ),
        compiler_params=pltpu.CompilerParams(
            dimension_semantics=("parallel", "parallel", "arbitrary"),
            vmem_limit_bytes=limit),
    )(xs, xs, w00, w01, w10, w11, b2)

    # TODO(synk): for C < 128 a lane-dense (N, Ho, Wo*C) output block avoids
    # masked partial stores; kept 4-D here to avoid an in-kernel lane merge.
    return jnp.transpose(out, (0, 3, 1, 2))              # NHWC -> NCHW


def _avgpool_downsample(x_nchw):
    """2x2 average pool, stride 2, no padding. NCHW in/out."""
    N, C, H, W = x_nchw.shape
    Ho, Wo = H // 2, W // 2
    dt = x_nchw.dtype
    in_b = jnp.dtype(dt).itemsize
    budget, limit = _vmem_config()

    # TODO(synk): reading NCHW directly in the kernel (stride-2 lane pairing)
    # would remove this space-to-depth pass and roughly halve HBM traffic.
    xc = x_nchw[:, :, :2 * Ho, :2 * Wo]
    xs = xc.reshape(N, C, Ho, 2, Wo, 2)
    xs = jnp.transpose(xs, (0, 2, 4, 3, 5, 1)).reshape(N, Ho, Wo, 4 * C)

    per_row = (2 * Wo * 4 * C * in_b          # input block (double buffered)
               + Wo * C * 4                   # f32 accumulator
               + 2 * Wo * C * in_b)           # output block (double buffered)
    tOh = _pick_band(Ho, per_row, 0, budget, _parallel_cap(N, Ho))

    grid = (N, Ho // tOh)
    out = pl.pallas_call(
        _avgpool_s2d_kernel,
        out_shape=jax.ShapeDtypeStruct((N, Ho, Wo, C), dt),
        grid_spec=pltpu.PrefetchScalarGridSpec(
            num_scalar_prefetch=0,
            grid=grid,
            in_specs=[pl.BlockSpec((1, tOh, Wo, 4 * C), lambda n, i: (n, i, 0, 0))],
            out_specs=pl.BlockSpec((1, tOh, Wo, C), lambda n, i: (n, i, 0, 0)),
        ),
        compiler_params=pltpu.CompilerParams(
            dimension_semantics=("parallel", "parallel"),
            vmem_limit_bytes=limit),
    )(xs)
    return jnp.transpose(out, (0, 3, 1, 2))


class Downsample:
    """JAX/Pallas port of the PyTorch Downsample module. Takes / returns NCHW."""

    def __init__(self, in_channels: int, with_conv: bool, key, compute_dtype=None):
        self.with_conv = with_conv
        self.compute_dtype = compute_dtype   # e.g. jnp.bfloat16 for production
        if with_conv:
            # deterministic init mimicking torch.nn.Conv2d default U(-b, b), b = 1/sqrt(fan_in)
            fan_in = in_channels * 3 * 3
            bound = 1.0 / (fan_in ** 0.5)
            kw_key, kb_key = jax.random.split(key)
            self.weight = jax.random.uniform(
                kw_key, (in_channels, in_channels, 3, 3), jnp.float32, -bound, bound)
            self.bias = jax.random.uniform(
                kb_key, (in_channels,), jnp.float32, -bound, bound)

    def __call__(self, x_nchw):
        if self.with_conv:
            return _conv_downsample(x_nchw, self.weight, self.bias, self.compute_dtype)
        return _avgpool_downsample(x_nchw)


# ------------------------------ reference / main -----------------------------

def _ref_conv(x_nchw, weight, bias):
    xp = jnp.pad(x_nchw, ((0, 0), (0, 0), (0, 1), (0, 1)))
    y = lax.conv_general_dilated(
        xp, weight, window_strides=(2, 2), padding="VALID",
        dimension_numbers=("NCHW", "OIHW", "NCHW"))
    return y + bias[None, :, None, None]


def _ref_avgpool(x_nchw):
    N, C, H, W = x_nchw.shape
    Ho, Wo = H // 2, W // 2
    xc = x_nchw[:, :, :2 * Ho, :2 * Wo]
    return xc.reshape(N, C, Ho, 2, Wo, 2).mean(axis=(3, 5))


if __name__ == "__main__":
    key = jax.random.PRNGKey(0)
    k_x, k_params = jax.random.split(key)

    N, C, H, W = 2, 4, 16, 16
    x = jax.random.normal(k_x, (N, C, H, W), jnp.float32)

    # with_conv = True path (f32 compute, exact vs reference)
    mod_conv = Downsample(C, with_conv=True, key=k_params)
    y_conv = jax.block_until_ready(mod_conv(x))
    y_conv_ref = _ref_conv(x, mod_conv.weight, mod_conv.bias)
    assert y_conv.shape == (N, C, H // 2, W // 2)
    assert jnp.allclose(y_conv, y_conv_ref, atol=1e-5, rtol=1e-5)

    # bf16-compute path (production setting from the perf review) — loose tol.
    mod_conv_bf16 = Downsample(C, with_conv=True, key=k_params,
                               compute_dtype=jnp.bfloat16)
    y_bf16 = jax.block_until_ready(mod_conv_bf16(x))
    assert jnp.allclose(y_bf16, y_conv_ref, atol=3e-2, rtol=3e-2)

    # with_conv = False path
    mod_pool = Downsample(C, with_conv=False, key=k_params)
    y_pool = jax.block_until_ready(mod_pool(x))
    y_pool_ref = _ref_avgpool(x)
    assert y_pool.shape == (N, C, H // 2, W // 2)
    assert jnp.allclose(y_pool, y_pool_ref, atol=1e-5, rtol=1e-5)

    print("KERNEL_OK")
</pallas_src>

<mosaic_0001>
module attributes {stable_mosaic.version = 11 : i64} {
  func.func @_conv_s2d_kernel(%arg0: i32, %arg1: i32, %arg2: i32, %arg3: memref<1x4x16x16xf32, #tpu.memory_space<vmem>>, %arg4: memref<1x1x16x16xf32, #tpu.memory_space<vmem>>, %arg5: memref<16x4xf32, #tpu.memory_space<vmem>>, %arg6: memref<16x4xf32, #tpu.memory_space<vmem>>, %arg7: memref<8x4xf32, #tpu.memory_space<vmem>>, %arg8: memref<4x4xf32, #tpu.memory_space<vmem>>, %arg9: memref<1x4xf32, #tpu.memory_space<vmem>>, %arg10: memref<1x4x8x4xf32, #tpu.memory_space<vmem>>) attributes {dimension_semantics = [#tpu.dimension_semantics<parallel>, #tpu.dimension_semantics<parallel>, #tpu.dimension_semantics<arbitrary>], iteration_bounds = array<i64: 2, 2, 1>, scalar_prefetch = 0 : i64, scratch_operands = 0 : i64, tpu.core_type = #tpu.core_type<tc>, window_params = [{transform_indices = @transform_0, window_bounds = array<i64: 1, 4, 16, 16>}, {transform_indices = @transform_1, window_bounds = array<i64: 1, 1, 16, 16>}, {transform_indices = @transform_2, window_bounds = array<i64: 16, 4>}, {transform_indices = @transform_3, window_bounds = array<i64: 16, 4>}, {transform_indices = @transform_4, window_bounds = array<i64: 8, 4>}, {transform_indices = @transform_5, window_bounds = array<i64: 4, 4>}, {transform_indices = @transform_6, window_bounds = array<i64: 1, 4>}, {transform_indices = @transform_7, window_bounds = array<i64: 1, 4, 8, 4>}]} {
    %c0 = arith.constant 0 : index
    %c0_0 = arith.constant 0 : index
    %c0_1 = arith.constant 0 : index
    %c0_2 = arith.constant 0 : index
    %0 = vector.load %arg3[%c0, %c0_0, %c0_1, %c0_2] : memref<1x4x16x16xf32, #tpu.memory_space<vmem>>, vector<1x4x16x16xf32>
    %1 = vector.shape_cast %0 : vector<1x4x16x16xf32> to vector<4x16x16xf32>
    %c0_3 = arith.constant 0 : index
    %c0_4 = arith.constant 0 : index
    %c0_5 = arith.constant 0 : index
    %c0_6 = arith.constant 0 : index
    %2 = vector.load %arg4[%c0_3, %c0_4, %c0_5, %c0_6] : memref<1x1x16x16xf32, #tpu.memory_space<vmem>>, vector<1x1x16x16xf32>
    %3 = vector.shape_cast %2 : vector<1x1x16x16xf32> to vector<1x16x16xf32>
    %4 = vector.extract_strided_slice %1 {offsets = [0, 0, 0], sizes = [4, 8, 16], strides = [1, 1, 1]} : vector<4x16x16xf32> to vector<4x8x16xf32>
    %5 = vector.extract_strided_slice %1 {offsets = [0, 1, 0], sizes = [4, 8, 16], strides = [1, 1, 1]} : vector<4x16x16xf32> to vector<4x8x16xf32>
    %6 = vector.extract_strided_slice %1 {offsets = [1, 0, 0], sizes = [3, 16, 8], strides = [1, 1, 1]} : vector<4x16x16xf32> to vector<3x16x8xf32>
    %7 = vector.extract_strided_slice %3 {offsets = [0, 0, 0], sizes = [1, 16, 8], strides = [1, 1, 1]} : vector<1x16x16xf32> to vector<1x16x8xf32>
    %8 = tpu.concatenate %6, %7 in 0 : vector<3x16x8xf32>, vector<1x16x8xf32> -> vector<4x16x8xf32>
    %9 = vector.extract_strided_slice %8 {offsets = [0, 0, 0], sizes = [4, 8, 8], strides = [1, 1, 1]} : vector<4x16x8xf32> to vector<4x8x8xf32>
    %10 = vector.extract_strided_slice %8 {offsets = [0, 1, 0], sizes = [4, 8, 4], strides = [1, 1, 1]} : vector<4x16x8xf32> to vector<4x8x4xf32>
    %11 = vector.shape_cast %4 : vector<4x8x16xf32> to vector<32x16xf32>
    %c0_7 = arith.constant 0 : index
    %c0_8 = arith.constant 0 : index
    %12 = vector.load %arg5[%c0_7, %c0_8] : memref<16x4xf32, #tpu.memory_space<vmem>>, vector<16x4xf32>
    %cst = arith.constant dense<0.000000e+00> : vector<32x4xf32>
    %13 = tpu.matmul %11, %12, %cst {dimension_numbers = #tpu.dot_dimension_numbers<[1], [0], [0], [1], [0, 0, 1, 1], [], []>} : vector<32x16xf32>, vector<16x4xf32>, vector<32x4xf32> -> vector<32x4xf32>
    %14 = vector.shape_cast %5 : vector<4x8x16xf32> to vector<32x16xf32>
    %c0_9 = arith.constant 0 : index
    %c0_10 = arith.constant 0 : index
    %15 = vector.load %arg6[%c0_9, %c0_10] : memref<16x4xf32, #tpu.memory_space<vmem>>, vector<16x4xf32>
    %cst_11 = arith.constant dense<0.000000e+00> : vector<32x4xf32>
    %16 = tpu.matmul %14, %15, %cst_11 {dimension_numbers = #tpu.dot_dimension_numbers<[1], [0], [0], [1], [0, 0, 1, 1], [], []>} : vector<32x16xf32>, vector<16x4xf32>, vector<32x4xf32> -> vector<32x4xf32>
    %17 = arith.addf %13, %16 : vector<32x4xf32>
    %18 = vector.shape_cast %9 : vector<4x8x8xf32> to vector<32x8xf32>
    %c0_12 = arith.constant 0 : index
    %c0_13 = arith.constant 0 : index
    %19 = vector.load %arg7[%c0_12, %c0_13] : memref<8x4xf32, #tpu.memory_space<vmem>>, vector<8x4xf32>
    %cst_14 = arith.constant dense<0.000000e+00> : vector<32x4xf32>
    %20 = tpu.matmul %18, %19, %cst_14 {dimension_numbers = #tpu.dot_dimension_numbers<[1], [0], [0], [1], [0, 0, 1, 1], [], []>} : vector<32x8xf32>, vector<8x4xf32>, vector<32x4xf32> -> vector<32x4xf32>
    %21 = arith.addf %17, %20 : vector<32x4xf32>
    %22 = vector.shape_cast %10 : vector<4x8x4xf32> to vector<32x4xf32>
    %c0_15 = arith.constant 0 : index
    %c0_16 = arith.constant 0 : index
    %23 = vector.load %arg8[%c0_15, %c0_16] : memref<4x4xf32, #tpu.memory_space<vmem>>, vector<4x4xf32>
    %cst_17 = arith.constant dense<0.000000e+00> : vector<32x4xf32>
    %24 = tpu.matmul %22, %23, %cst_17 {dimension_numbers = #tpu.dot_dimension_numbers<[1], [0], [0], [1], [0, 0, 1, 1], [], []>} : vector<32x4xf32>, vector<4x4xf32>, vector<32x4xf32> -> vector<32x4xf32>
    %25 = arith.addf %21, %24 : vector<32x4xf32>
    %c0_18 = arith.constant 0 : index
    %c0_19 = arith.constant 0 : index
    %26 = vector.load %arg9[%c0_18, %c0_19] : memref<1x4xf32, #tpu.memory_space<vmem>>, vector<1x4xf32>
    %27 = vector.broadcast %26 : vector<1x4xf32> to vector<32x4xf32>
    %28 = arith.addf %25, %27 : vector<32x4xf32>
    %29 = vector.shape_cast %28 : vector<32x4xf32> to vector<1x4x8x4xf32>
    %c0_20 = arith.constant 0 : index
    %c0_21 = arith.constant 0 : index
    %c0_22 = arith.constant 0 : index
    %c0_23 = arith.constant 0 : index
    %30 = vector.load %arg10[%c0_20, %c0_21, %c0_22, %c0_23] : memref<1x4x8x4xf32, #tpu.memory_space<vmem>>, vector<1x4x8x4xf32>
    tpu.vector_store %arg10[%c0_20, %c0_21, %c0_22, %c0_23], %29 {strides = array<i32>} : memref<1x4x8x4xf32, #tpu.memory_space<vmem>>, vector<1x4x8x4xf32>,
    return
  }
  func.func @transform_0(%arg0: i32, %arg1: i32, %arg2: i32) -> (i32, i32, i32, i32) {
    %c0_i32 = arith.constant 0 : i32
    %c0_i32_0 = arith.constant 0 : i32
    %c0_i32_1 = arith.constant 0 : i32
    return %arg0, %arg1, %c0_i32, %c0_i32_0 : i32, i32, i32, i32
  }
  func.func @transform_1(%arg0: i32, %arg1: i32, %arg2: i32) -> (i32, i32, i32, i32) {
    %c1_i32 = arith.constant 1 : i32
    %0 = arith.addi %arg1, %c1_i32 : i32
    %c4_i32 = arith.constant 4 : i32
    %1 = arith.muli %0, %c4_i32 : i32
    %c0_i32 = arith.constant 0 : i32
    %c0_i32_0 = arith.constant 0 : i32
    %c0_i32_1 = arith.constant 0 : i32
    return %arg0, %1, %c0_i32, %c0_i32_0 : i32, i32, i32, i32
  }
  func.func @transform_2(%arg0: i32, %arg1: i32, %arg2: i32) -> (i32, i32) {
    %c0_i32 = arith.constant 0 : i32
    %c0_i32_0 = arith.constant 0 : i32
    return %c0_i32, %arg2 : i32, i32
  }
  func.func @transform_3(%arg0: i32, %arg1: i32, %arg2: i32) -> (i32, i32) {
    %c0_i32 = arith.constant 0 : i32
    %c0_i32_0 = arith.constant 0 : i32
    return %c0_i32, %arg2 : i32, i32
  }
  func.func @transform_4(%arg0: i32, %arg1: i32, %arg2: i32) -> (i32, i32) {
    %c0_i32 = arith.constant 0 : i32
    %c0_i32_0 = arith.constant 0 : i32
    return %c0_i32, %arg2 : i32, i32
  }
  func.func @transform_5(%arg0: i32, %arg1: i32, %arg2: i32) -> (i32, i32) {
    %c0_i32 = arith.constant 0 : i32
    %c0_i32_0 = arith.constant 0 : i32
    return %c0_i32, %arg2 : i32, i32
  }
  func.func @transform_6(%arg0: i32, %arg1: i32, %arg2: i32) -> (i32, i32) {
    %c0_i32 = arith.constant 0 : i32
    %c0_i32_0 = arith.constant 0 : i32
    return %c0_i32, %arg2 : i32, i32
  }
  func.func @transform_7(%arg0: i32, %arg1: i32, %arg2: i32) -> (i32, i32, i32, i32) {
    %c0_i32 = arith.constant 0 : i32
    %c0_i32_0 = arith.constant 0 : i32
    return %arg0, %arg1, %c0_i32, %arg2 : i32, i32, i32, i32
  }
}

</mosaic_0001>

<bundles_post_ra>
// kernel: tpu_custom_call.1
= control target key start
LH: loop header
LB: loop body
LE: loop exit
PB: predicated region body
PF: predicated region fallthrough
CT: control target
= control target key end

     0   :  { %s1861_s0 = inlined_call_operand.hbm [shape: f32[2,9,16,16], index: 0, kind: input, shape index: {}]   ;;  %s1862_s1 = inlined_call_operand.hbm [shape: f32[2,9,16,16], index: 1, kind: input, shape index: {}]   ;;  %s1863_s2 = inlined_call_operand.vmem [shape: f32[16,4], index: 2, kind: input, shape index: {}]   ;;  %s1864_s3 = inlined_call_operand.vmem [shape: f32[16,4], index: 3, kind: input, shape index: {}]   ;;  %s1865_s4 = inlined_call_operand.vmem [shape: f32[8,4], index: 4, kind: input, shape index: {}]   ;;  %s1866_s5 = inlined_call_operand.vmem [shape: f32[4,4], index: 5, kind: input, shape index: {}]   ;;  %s1867_s6 = inlined_call_operand.vmem [shape: f32[1,4], index: 6, kind: input, shape index: {}]   ;;  %s1868_s7 = inlined_call_operand.vmem [shape: f32[2,8,8,4], index: 7, kind: output, shape index: {}]  }
   0x1   :  { %1875 = sst [smem:[#allocation14_spill]] %s1863_s2 }
   0x2   :  { %1876 = sst [smem:[#allocation15_spill]] %s1866_s5 }
   0x3   :  { %1877 = sst [smem:[#allocation16_spill]] %s1867_s6 }
   0x4   :  { %1878 = sst [smem:[#allocation17_spill]] %s1868_s7 }
   0x5   :  { %12 = vsyncpa [#allocation3], 0 }
   0x6   :  { %14 = vsyncpa [#allocation3 + $0x1], 0 }
   0x7   :  { %15 = vsyncpa [#allocation5], 0 }
   0x8   :  { %17 = vsyncpa [#allocation5 + $0x1], 0  ;;  %s1577_s24 = smov 0   ;;  %s1579_s25 = smov 0  }
   0x9   :  { %s1581_s26 = smov 0   ;;  %s1583_s27 = smov 0  }
   0xa   :  { %s1585_s28 = smov 0   ;;  %s1587_s29 = smov 0  }
   0xb   :  { %s1589_s30 = smov 0   ;;  %s1591_s8 = smov 0  }
   0xc   :  { %s1593_s9 = smov 0   ;;  %s1595_s10 = smov 0  }
   0xd   :  { %s1597_s11 = smov 0  }
   0xe LB: > { %1879 = sst [smem:[#allocation8_spill]] %s1509_s29  ;;  %s1144_s12 = sadd.s32 4294967295, %s1529_s11   ;;  %s1529_s11 = sphi %s1597_s11, %s23_s11   ;;  %s1525_s10 = sphi %s1595_s10, %s1909_s10   ;;  %s1521_s9 = sphi %s1593_s9, %s1908_s9   ;;  %s1517_s8 = sphi %s1591_s8, %s1907_s8   ;;  %s1513_s30 = sphi %s1589_s30, %s1906_s30   ;;  %s1509_s29 = sphi %s1587_s29, %s1898_s29   ;;  %s1505_s28 = sphi %s1585_s28, %s1905_s28   ;;  %s1501_s27 = sphi %s1583_s27, %s1904_s27   ;;  %s1497_s26 = sphi %s1581_s26, %s1903_s26   ;;  %s1493_s25 = sphi %s1579_s25, %s1902_s25   ;;  %s1489_s24 = sphi %s1577_s24, %s1901_s24  }
   0xf   : > { %1880 = sst [smem:[#allocation9_spill]] %s1513_s30  ;;  %s38_s13 = sadd.s32 1, %s1521_s9 }
  0x10   : > { %1881 = sst [smem:[#allocation10_spill]] %s1517_s8  ;;  %p40_p0 = scmp.ge.s32.totalorder %s38_s13, 2 }
  0x11   : > { %s42_s14 = sadd.s32 1, %s1525_s10  ;;  %s51_s15 = sadd.s32 1, %s1509_s29 }
  0x12   : > { %p58_p1 = scmp.ne.s32.totalorder %s1509_s29, %s1505_s28  ;;  %s1911_s13 = smov (%p40_p0, %s38_s13), 0 }
  0x13   : > { %1882 = sst [smem:[#allocation11_spill]] %s1911_s13  ;;  %s1913_s14 = smov (!%p40_p0, %s42_s14), %s1525_s10 }
  0x14   : > { %s47_s16 = ssub.s32 %s1521_s9, %s1911_s13  ;;  %p59_p2 = scmp.eq.s32.totalorder %s1529_s11, 0 }
  0x15   : > { %p44_p3 = scmp.ge.s32.totalorder %s1913_s14, 2  ;;  %p64_p4 = scmp.ne.s32.totalorder %s1505_s28, %s1501_s27 }
  0x16   : > { %p1645_p5 = por %p59_p2, %p58_p1  ;;  %p1649_p6 = scmp.eq.s32.totalorder %s1144_s12, 0 }
  0x17   : > { %s1915_s14 = smov (%p44_p3, %s1913_s14), 0  ;;  %s1194_s20 = sshll.u32 %s1521_s9, 2 }
  0x18   : > { %1885 = sst [smem:[#allocation12_spill]] %s1915_s14  ;;  %p1657_p7 = por %p1649_p6, %p64_p4 }
  0x19   : > { %s46_s21 = ssub.s32 %s1525_s10, %s1915_s14  ;;  %s1195_s22 = sadd.s32 4, %s1194_s20 }
  0x1a   : > { %s48_s23 = sor.u32 %s47_s16, %s46_s21  ;;  %s1196_s27 = sshll.u32 %s1911_s13, 2 }
  0x1b   : > { %p49_p8 = scmp.eq.s32.totalorder %s48_s23, 0  ;;  %s1197_s12 = sadd.s32 4, %s1196_s27 }
  0x1c   : > { %s79_s7 = ssub.s32 %s1195_s22, %s1197_s12  ;;  %s83_s6 = sadd.s32 1, %s1497_s26 }
  0x1d   : > { %s1667_s8 = scalar_select %p49_p8, %s1509_s29, %s51_s15  }
  0x1e   : > { %s80_s30 = sor.u32 %s79_s7, %s46_s21  ;;  %p90_p9 = scmp.ne.s32.totalorder %s1497_s26, %s1493_s25 }
  0x1f   : > { %1887 = sst [smem:[#allocation13_spill]] %s1667_s8  ;;  %p81_p10 = scmp.eq.s32.totalorder %s80_s30, 0 }
  0x20   : > { %p96_p11 = scmp.ne.s32.totalorder %s1493_s25, %s1489_s24  ;;  %p1675_p12 = por %p90_p9, %p59_p2 }
  0x21   : > { %s1680_s2 = scalar_select %p81_p10, %s1497_s26, %s83_s6  }
  0x22   : > { %p1684_p13 = por %p96_p11, %p1649_p6  ;;  %p1154_p0 = scmp.ge.s32.totalorder %s1529_s11, 4 }
  0x24   : > { %s1889_s16 = scalar_select %p1684_p13, 1, 0 }
  0x25   : > { %310 = sbr.rel (%p1154_p0) target bundleno = 103 (0x67), region = 36 }
  0x2c   : > { %313 = sbr.rel (!%p1645_p5) target bundleno = 74 (0x4a), region = 40  ;;  %s314_s7 = sand.u32 (%p1645_p5), 1, %s1509_s29  }
  0x2d   : > { %s1155_s24 = sshll.u32 (%p1645_p5), %s314_s7, 6  ;;  %s1692_s30 = scalar_lea.sflag (%p1645_p5), [#allocation3], %s314_s7 }
  0x2e   : > { %s318_s6 = scalar_lea.vmem (%p1645_p5), [#allocation2], %s1155_s24  ;;  %s1199_s15 = sshll.u32 (%p1645_p5), %s1521_s9, 3 }
  0x2f   : > { %s1280_s18 = smul.u32 (%p1645_p5), 18, %s1525_s10  ;;  %s336_s20 = sshll.u32 (%p1645_p5), %s318_s6, 4  ;;  %s1696_s20 = int_to_ptr.vmem [resolvable:$true] %s336_s20 }
  0x30   : > { %s1380_s8 = scalar_lea.hbm (%p1645_p5), %s1861_s0, 4608 }
  0x31   : > { %s331_s21 = sadd.s32 (%p1645_p5), %s1280_s18, %s1199_s15 }
  0x32   : > { %s1161_s22 = sshll.u32 (%p1645_p5), %s331_s21, 7 }
  0x33   : > { %s333_s17 = scalar_lea.hbm %s1861_s0, %s1161_s22 }
  0x34   : > { %s1376_s12 = scalar_lea.hbm %s333_s17, 1024  ;;  %p1381_p2 = scmp.lt.u32.totalorder %s333_s17, %s1861_s0 }
  0x35   : > { %p1377_p1 = scmp.ne.s32.totalorder %s333_s17, %s1376_s12  ;;  %p1382_p3 = scmp.lt.u32.totalorder %s1380_s8, %s1376_s12 }
  0x36   : > { %p1384_p5 = scmp.lt.u32.totalorder %s1376_s12, %s333_s17 }
  0x37   : > { %p1383_p4 = por %p1382_p3, %p1381_p2 }
  0x39   : > { %p1385_p6 = por %p1384_p5, %p1383_p4 }
  0x3b   : > { %p1386_p8 = pnand %p1385_p6, %p1377_p1 }
  0x3d   : > { %1389 = shalt.err (!%p1386_p8)
}
  0x3e   : > { %s1390_s24 = scalar_lea.vmem %s1696_s20, 1024  ;;  %s1531_s6 = smov [#allocation2]  }
  0x3f   : > { %p1391_p9 = scmp.ne.s32.totalorder %s1696_s20, %s1390_s24  ;;  %s1394_s15 = sshll.u32 %s1531_s6, 4  ;;  %s1395_s15 = int_to_ptr.vmem [resolvable:$false] %s1394_s15 }
  0x40   : > { %s1396_s13 = scalar_lea.vmem %s1395_s15, 2048  ;;  %p1397_p10 = scmp.lt.s32.totalorder %s1696_s20, %s1395_s15 }
  0x41   : > { %p1398_p11 = scmp.lt.s32.totalorder %s1396_s13, %s1390_s24 }
  0x43   : > { %p1399_p0 = por %p1398_p11, %p1397_p10 }
  0x45   : > { %p1400_p13 = pnand %p1399_p0, %p1391_p9 }
  0x47   : > { %1403 = shalt.err (!%p1400_p13)
}
  0x48   : > { %s1532_s29 = smov 128   ;;  %s1533_s8 = smov 8  }
  0x49   : > { %342 = dma.hbm_to_vmem [thread:$0]  %s333_s17, 1024, %s1696_s20, %s1692_s30, %s1532_s29, %s1532_s29, %s1533_s8  }
  0x4a PF: > { %s346_s14 = sand.u32 1, %s1497_s26   ;;  %s1166_s18 = sshll.u32 %s1521_s9, 3 }
  0x4b   : > { %s1165_s21 = sshll.u32 %s346_s14, 4  ;;  %s997_s22 = smul.u32 18, %s1525_s10 }
  0x4c   : > { %s350_s23 = scalar_lea.vmem [#allocation4], %s1165_s21  ;;  %s1722_s20 = scalar_lea.sflag [#allocation5], %s346_s14 }
  0x4d   : > { %s361_s27 = sshll.u32 %s350_s23, 4  ;;  %s998_s12 = sadd.s32 %s1166_s18, %s997_s22  ;;  %s1715_s27 = int_to_ptr.vmem [resolvable:$true] %s361_s27 }
  0x4e   : > { %s1167_s7 = sshll.u32 %s998_s12, 7  ;;  %s1408_s8 = scalar_lea.hbm %s1862_s1, 4608 }
  0x4f   : > { %s1000_s15 = scalar_lea.hbm %s1862_s1, %s1167_s7 }
  0x50   : > { %s1720_s30 = scalar_lea.hbm %s1000_s15, 1024  ;;  %s1432_s17 = scalar_lea.hbm %s1000_s15, 1280 }
  0x51   : > { %p1405_p13 = scmp.ne.s32.totalorder %s1720_s30, %s1432_s17  ;;  %p1409_p3 = scmp.lt.u32.totalorder %s1720_s30, %s1862_s1 }
  0x52   : > { %p1410_p4 = scmp.lt.u32.totalorder %s1408_s8, %s1432_s17  ;;  %p1412_p6 = scmp.lt.u32.totalorder %s1432_s17, %s1720_s30 }
  0x53   : > { %p1406_p1 = pnand %p1405_p13, %p1675_p12 }
  0x54   : > { %p1411_p5 = por %p1410_p4, %p1409_p3 }
  0x55   : > { %p1407_p2 = pneg %p1406_p1 }
  0x56   : > { %p1413_p8 = por %p1412_p6, %p1411_p5 }
  0x58   : > { %p1414_p9 = pnand %p1413_p8, %p1407_p2 }
  0x5a   : > { %1417 = shalt.err (!%p1414_p9)
}
  0x5b   : > { %s1418_s14 = scalar_lea.vmem %s1715_s27, 256  ;;  %s1534_s22 = smov [#allocation4]  }
  0x5c   : > { %p1419_p10 = scmp.ne.s32.totalorder %s1715_s27, %s1418_s14  ;;  %s1422_s23 = sshll.u32 %s1534_s22, 4  ;;  %s1423_s23 = int_to_ptr.vmem [resolvable:$false] %s1422_s23 }
  0x5d   : > { %s1424_s12 = scalar_lea.vmem %s1423_s23, 512  ;;  %p1425_p13 = scmp.lt.s32.totalorder %s1715_s27, %s1423_s23 }
  0x5e   : > { %p1420_p11 = pnand %p1419_p10, %p1675_p12  ;;  %p1426_p1 = scmp.lt.s32.totalorder %s1424_s12, %s1418_s14 }
  0x60   : > { %p1421_p0 = pneg %p1420_p11  ;;  %p1427_p3 = por %p1426_p1, %p1425_p13 }
  0x62   : > { %p1428_p4 = pnand %p1427_p3, %p1421_p0 }
  0x64   : > { %1431 = shalt.err (!%p1428_p4)
}
  0x65   : > { %s1535_s7 = smov 128   ;;  %s1536_s24 = smov 8  }
  0x66   : > { %1281 = dma.hbm_to_vmem [thread:$0]  (%p1675_p12), %s1720_s30, 256, %s1715_s27, %s1722_s20, %s1535_s7, %s1535_s7, %s1536_s24  }
  0x67 PF: > { %p1168_p2 = scmp.ge.s32.totalorder %s1529_s11, 1  ;;  %p369_p5 = scmp.lt.s32.totalorder %s1529_s11, 5 }
  0x69   : > { %p370_p6 = pnand %p1168_p2, %p369_p5 }
  0x6a   : > { %s375_s6 = sand.u32 (!%p370_p6), 1, %s1505_s28  }
  0x6b   : > { %373 = sbr.rel (%p370_p6) target bundleno = 357 (0x165), region = 48  ;;  %s1169_s15 = sshll.u32 (!%p370_p6), %s375_s6, 6 }
  0x6c   : > { %s376_s17 = scalar_lea.sflag (!%p370_p6), [#allocation3], %s375_s6  ;;  %s1748_s13 = scalar_lea.vmem (!%p370_p6), [#allocation2], %s1169_s15 }
  0x72   : > { %1478 = dma.done.wait (%p1657_p7), %s376_s17, 1024  }
  0x73   : > { %1480 = vsyncadd (%p1657_p7), %s376_s17, 4294966272  ;;  %s384_s5 = sand.u32 1, %s1493_s25   ;;  %p1890_p12 = scmp.ne.s32.totalorder %s1889_s16, 0 }
  0x74   : > { %s1755_s27 = sshll.u32 %s384_s5, 4  ;;  %s385_s30 = scalar_lea.sflag [#allocation5], %s384_s5 }
  0x75   : > { %s388_s20 = scalar_lea.vmem [#allocation4], %s1755_s27 }
  0x76   : > { %1482 = dma.done.wait (%p1890_p12), %s385_s30, 256  }
  0x77   : > { %1484 = vsyncadd (%p1890_p12), %s385_s30, 4294967040  ;;  %vm713_vm0 = vcmask 64512   ;;  %v712_v0 = vld [vmem:[%s1865_s4] sm:$0xff]  ;;  %v492_v1 = vld [vmem:[%s1748_s13 + $0x10] sm:$0xff]  ;;  %vm510_vm1 = vcmask 1046528   ;;  %vm525_vm2 = vcmask 130048  }
  0x78   : > { %v523_v2 = vld [vmem:[%s1864_s3] sm:$0xff]  ;;  %1244 = vmatprep.subr.mxu0 %v712_v0  ;;  %v514_v3 = vrot.slane %v492_v1, 1  ;;  %1246 = vmatprep.mubr.msk.f32.mxu0 %vm713_vm0, %v492_v1  ;;  %v524_v4 = vld [vmem:[%s1864_s3 + $0x8] sm:$0xff]  ;;  %v496_v10 = vld [vmem:[%s1748_s13 + $0x30] sm:$0xff]  ;;  %vm826_vm3 = vcmask 1043456   ;;  %s1891_s23 = sld [smem:[#allocation14_spill]] }
  0x79   : > { %v494_v5 = vld [vmem:[%s1748_s13 + $0x20] sm:$0xff]  ;;  %1245 = vmatpush3.msra.mxu0 %v712_v0  ;;  %v1260_v7 = vpack.c.bf16 %v524_v4, %v523_v2  ;;  %v491_v8 = vld [vmem:[%s1748_s13 + $0x8] sm:$0xff]  ;;  %v493_v11 = vld [vmem:[%s1748_s13 + $0x18] sm:$0xff]  ;;  %v520_v18 = vrot.slane %v496_v10, 1  ;;  %s1892_s15 = sld [smem:[#allocation15_spill]]  ;;  %vm817_vm4 = vcmask 31744  }
  0x7a   : > { %v490_v6 = vld [vmem:[%s1748_s13] sm:$0xff]  ;;  %v517_v12 = vrot.slane %v494_v5, 1  ;;  %1247 = vmatmul.mubr.msk.f32.vlgmr.msra.gmra.mrb[0].mxu0 %vm713_vm0, %v494_v5  ;;  %v512_v13 = vrot.slane %v491_v8, 1  ;;  %v515_v14 = vrot.slane %v493_v11, 1  ;;  %v495_v21 = vld [vmem:[%s1748_s13 + $0x28] sm:$0xff]  ;;  %v497_v22 = vld [vmem:[%s1748_s13 + $0x38] sm:$0xff] }
  0x7b   : > { %v511_v9 = vrot.slane %v490_v6, 1  ;;  %v498_v17 = vld [vmem:[%s388_s20] sm:$0xff]  ;;  %1261 = vmatprep.subr.bf16.mxu1 %v1260_v7  ;;  %1249 = vmatprep.mubr.msk.f32.mxu0 %vm713_vm0, %v496_v10  ;;  %v518_v25 = vrot.slane %v495_v21, 1  ;;  %v521_v26 = vrot.slane %v497_v22, 1  ;;  %v499_v27 = vld [vmem:[%s388_s20 + $0x8] sm:$0xff]  ;;  %s1893_s17 = sld [smem:[#allocation9_spill]] }
  0x7c   : > { %1263 = vmatpush3.bf16.msra.mxu1 %v1260_v7  ;;  %v516_v24 = vsel %vm510_vm1, %v514_v3, %v515_v14  ;;  %v813_v29 = vrot.slane %v498_v17, 1  ;;  %s1894_s13 = sld [smem:[#allocation10_spill]]  ;;  %v814_v30 = vrot.slane %v499_v27, 1  ;;  %s1895_s8 = sld [smem:[#allocation16_spill]] }
  0x7d   : > { %v513_v23 = vsel %vm510_vm1, %v511_v9, %v512_v13  ;;  %v519_v28 = vsel %vm510_vm1, %v517_v12, %v518_v25  ;;  %v522_v31 = vsel %vm510_vm1, %v520_v18, %v521_v26  ;;  %s1896_s21 = sld [smem:[#allocation17_spill]] }
  0x7e   : > { %v500_v15 = vld [vmem:[%s1891_s23] sm:$0xff]  ;;  %v501_v16 = vld [vmem:[%s1891_s23 + $0x8] sm:$0xff]  ;;  %1228 = vmatprep.mubr.msk.f32.mxu1 %vm525_vm2, %v513_v23  ;;  %1250 = vmatmul.mubr.msk.f32.gmra.mrb[2].mxu0 %vm713_vm0, %v498_v17  ;;  %v815_v32 = vsel %vm510_vm1, %v813_v29, %v814_v30 }
  0x7f   : > { %v1264_v19 = vpack.c.bf16 %v501_v16, %v500_v15  ;;  %v816_v20 = vld [vmem:[%s1892_s15] sm:$0xf]  ;;  %1229 = vmatmul.mubr.msk.f32.vlgmr.msra.gmra.mrb[0].mxu1 %vm525_vm2, %v516_v24  ;;  %1254 = vmatprep.mubr.msk.f32.mxu0 %vm817_vm4, %v516_v24 }
  0x80   : > { %1252 = vmatprep.subr.msk.mxu0 %vm826_vm3, %v816_v20  ;;  %1231 = vmatprep.mubr.msk.f32.mxu1 %vm525_vm2, %v519_v28 }
  0x81   : > { %1265 = vmatprep.subr.bf16.mxu1 %v1264_v19  ;;  %1253 = vmatpush3.msk.msra.mxu0 %vm826_vm3, %v816_v20  ;;  %s1171_s5 = sshll.u32 %s1893_s17, 2 }
  0x82   : > { %1267 = vmatpush3.bf16.msra.mxu1 %v1264_v19  ;;  %1255 = vmatmul.mubr.msk.f32.vlgmr.msra.gmra.mrb[0].mxu0 %vm817_vm4, %v519_v28  ;;  %p478_p7 = scmp.lt.s32.totalorder %s1894_s13, 1  ;;  %p480_p8 = scmp.lt.s32.totalorder %s1171_s5, 7  ;;  %v1191_v37 = vld [vmem:[%s1895_s8] ss:$0 sm:$0xff] }
  0x83   : > { %1232 = vmatmul.mubr.msk.f32.gmra.mrb[2].mxu1 %vm525_vm2, %v522_v31  ;;  %1257 = vmatprep.mubr.msk.f32.mxu0 %vm817_vm4, %v522_v31 }
  0x84   : > { %1238 = vmatprep.mubr.msk.f32.mxu1 %vm525_vm2, %v490_v6  ;;  %s1917_s13 = smov (!%p478_p7, %s1894_s13), 1  ;;  %s1919_s5 = smov (!%p480_p8, %s1171_s5), 7 }
  0x85   : > { %s1172_s27 = sshll.u32 %s1917_s13, 3 }
  0x86   : > { %1258 = vmatmul.mubr.msk.f32.gmra.mrb[2].mxu0 %vm817_vm4, %v815_v32  ;;  %s486_s30 = sadd.s32 %s1172_s27, %s1919_s5 }
  0x87   : > { %1239 = vmatmul.mubr.msk.f32.vlgmr.msra.gmra.mrb[0].mxu1 %vm525_vm2, %v492_v1  ;;  %s1173_s20 = sshll.u32 %s486_s30, 3 }
  0x88   : > { %1241 = vmatprep.mubr.msk.f32.mxu1 %vm525_vm2, %v494_v5  ;;  %s488_s14 = scalar_lea.vmem %s1896_s21, %s1173_s20 }
  0x8b   : > { %1242 = vmatmul.mubr.msk.f32.gmra.mrb[2].mxu1 %vm525_vm2, %v496_v10 }
 0x155   : > { %v1256_v33 = vpop.f32.mrb[0].mxu0 }
 0x156   : > { %v896_v34 = vpop.f32.mrb[1].mxu0 }
 0x159   : > { %v1259_v35 = vpop.f32.mrb[2].mxu0 }
 0x15a   : > { %v1240_v36 = vpop.f32.mrb[0].mxu1  ;;  %v906_v38 = vpop.f32.mrb[3].mxu0 }
 0x15b   : > { %v1268_v39 = vadd.f32 %v1256_v33, %v1240_v36  ;;  %v693_v40 = vpop.f32.mrb[1].mxu1 }
 0x15c   : > { %v1269_v41 = vadd.f32 %v896_v34, %v693_v40 }
 0x15d   : > { %v927_v42 = vadd.f32 %v1268_v39, %v1191_v37 }
 0x15e   : > { %v926_v43 = vadd.f32 %v1269_v41, %v1191_v37  ;;  %v1243_v44 = vpop.f32.mrb[2].mxu1 }
 0x15f   : > { %931 = vst.msk [vmem:[%s488_s14 + $0x8] sm:$0xff] %vm817_vm4, %v927_v42  ;;  %v1270_v45 = vadd.f32 %v1259_v35, %v1243_v44  ;;  %v703_v46 = vpop.f32.mrb[3].mxu1 }
 0x160   : > { %930 = vst.msk [vmem:[%s488_s14] sm:$0xff] %vm817_vm4, %v926_v43  ;;  %v1271_v47 = vadd.f32 %v906_v38, %v703_v46 }
 0x161   : > { %v929_v48 = vadd.f32 %v1270_v45, %v1191_v37 }
 0x162   : > { %v928_v49 = vadd.f32 %v1271_v47, %v1191_v37 }
 0x163   : > { %933 = vst.msk [vmem:[%s488_s14 + $0x18] sm:$0xff] %vm817_vm4, %v929_v48 }
 0x164   : > { %932 = vst.msk [vmem:[%s488_s14 + $0x10] sm:$0xff] %vm817_vm4, %v928_v49 }
 0x165 PF: > { %s23_s11 = sadd.s32 1, %s1529_s11   ;;  %s1897_s22 = sld [smem:[#allocation8_spill]] }
 0x166   : > { %p20_p9 = scmp.ge.s32.totalorder %s23_s11, 6   ;;  %s1898_s29 = sld [smem:[#allocation13_spill]] }
 0x167   : > { %s1899_s12 = sld [smem:[#allocation11_spill]]  ;;  %s1900_s7 = sld [smem:[#allocation12_spill]] }
 0x168   : > { %s1901_s24 = smov %s1493_s25  ;;  %s1902_s25 = smov %s1497_s26 }
 0x169   : > { %s1903_s26 = smov %s1680_s2  ;;  %s1904_s27 = smov %s1505_s28 }
 0x16a   : > { %s1906_s30 = smov %s1521_s9  ;;  %s1907_s8 = smov %s1525_s10 }
 0x16b   : > { %s1905_s28 = smov %s1897_s22  ;;  %22 = sbr.rel (!%p20_p9) target bundleno = 14 (0xe), region = 116 }
 0x16d   : > { %s1908_s9 = smov %s1899_s12  ;;  %s1909_s10 = smov %s1900_s7 }
 0x172   :  { %970 = vsyncpa [#allocation3], 1 }
 0x173   :  { %972 = vsyncpa [#allocation3 + $0x1], 1 }
 0x174   :  { %973 = vsyncpa [#allocation5], 1 }
 0x175   :  { %975 = vsyncpa [#allocation5 + $0x1], 1 }

</bundles_post_ra>
